<compile_context>
chip_gen: v6e
topology: v6e:2x2x1
jax: 0.10.0
libtpu: 0.0.40
codegen_flags: <defaults>
</compile_context>

<pallas_src>
from types import SimpleNamespace

import jax
import jax.numpy as jnp
from jax import lax
from jax.experimental import pallas as pl
from jax.experimental.pallas import tpu as pltpu


# ----------------------------- helpers / config ------------------------------

def _use_eup_recip():
    # pl.reciprocal(approx=True) lowers on real TPUs (EUP slot, essentially free);
    # keep the portable divide for any non-TPU / interpret fallback.
    return jax.default_backend() == "tpu"


def _sigmoid(z):
    denom = 1.0 + jnp.exp(-z)
    if _use_eup_recip():
        return pl.reciprocal(denom, approx=True)
    return 1.0 / denom


def _pick_block_batch(B, target=8):
    """Largest divisor of B that is <= target while keeping >= 2 grid steps
    (so v7x's two TensorCores both get work).  B == 1 falls back to 1."""
    best = 1
    for bb in range(1, min(B, target) + 1):
        if B % bb == 0 and B // bb >= 2:
            best = bb
    return best


def _const_spec(a):
    """Full-array block, same block for every grid step (stays VMEM-resident)."""
    return pl.BlockSpec(a.shape, lambda b, n=a.ndim: (0,) * n)


# ----------------------------- Pallas kernels ------------------------------

def make_se_kernel(pack, hw_total):
    """SEBlock: global-avg-pool -> fc1 -> relu -> fc2 -> sigmoid -> channel scale.

    x_ref is [Bb, HW/pack, pack*C] (lane-packed so the lane dim is >=128 even
    for C=64); compute is f32, HBM I/O is bf16."""
    inv_hw = 1.0 / float(hw_total)

    def kernel(x_ref, w1_ref, b1_ref, w2_ref, b2_ref, o_ref):
        Cp = x_ref.shape[-1]
        C = Cp // pack
        # First pass over the block: pooled channel means (re-read later for scaling).
        xsum = jnp.sum(x_ref[...].astype(jnp.float32), axis=1)          # [Bb, pack*C]
        pooled = xsum[:, 0:C]
        for g in range(1, pack):
            pooled = pooled + xsum[:, g * C:(g + 1) * C]
        pooled = pooled * inv_hw                                         # [Bb, C]
        h = jnp.dot(pooled, w1_ref[...], preferred_element_type=jnp.float32) + b1_ref[...]
        h = jnp.maximum(h, 0.0)                                          # ReLU
        a = _sigmoid(jnp.dot(h, w2_ref[...], preferred_element_type=jnp.float32) + b2_ref[...])
        if pack > 1:
            a = jnp.concatenate([a] * pack, axis=-1)                     # [Bb, pack*C]
        # Second pass: channel scale (x * attention).
        o_ref[...] = (x_ref[...].astype(jnp.float32) * a[:, None, :]).astype(o_ref.dtype)

    return kernel


def make_layer4_head_kernel(H, W, ks, use_se, use_sa, use_drop, drop_rate):
    """Fused layer-4 attention + head (per batch-block of Bb samples):

      a    = sigmoid(fc2(relu(fc1(mean_hw(x)))))            (SE512, pre-scale x)
      s    = sigmoid(conv_{512->1,ks}(x))                   (spatial attn, pre-scale x)
      feat = mean_hw(x * s) * a      ( == mean_hw(x*s*a), a is per-channel )
      f    = relu(feat @ Wfc + bfc);  dropout(f)
      out  = f @ [Wxyz | Wwpqr] + [bxyz | bwpqr]

    The scaled feature map never touches HBM.  Both attentions are computed from
    the same pre-scale x, exactly like the PyTorch forward."""
    pad = ks // 2 if use_sa else 0
    keep = 1.0 - float(drop_rate)
    inv_hw = 1.0 / float(H * W)

    def kernel(*refs):
        refs = list(refs)
        acc_scr = refs.pop() if use_sa else None       # scratch ref is last
        o_ref = refs.pop()                             # output ref before scratch
        it = iter(refs)                                # inputs in call order
        x_ref = next(it)
        if use_sa:
            wc_ref = next(it)
            bc_ref = next(it)
        if use_se:
            w1_ref = next(it)
            b1_ref = next(it)
            w2_ref = next(it)
            b2_ref = next(it)
        wfc_ref = next(it)
        bfc_ref = next(it)
        w6_ref = next(it)
        b6_ref = next(it)
        u_ref = next(it) if use_drop else None

        C = x_ref.shape[-1]

        a = None
        pooled = None
        if use_se or not use_sa:
            pooled = jnp.sum(x_ref[...].astype(jnp.float32), axis=(1, 2)) * inv_hw   # [Bb, C]
        if use_se:
            h = jnp.dot(pooled, w1_ref[...], preferred_element_type=jnp.float32) + b1_ref[...]
            h = jnp.maximum(h, 0.0)
            a = _sigmoid(jnp.dot(h, w2_ref[...], preferred_element_type=jnp.float32) + b2_ref[...])

        if use_sa:
            # Conv2d(512, 1, ks, padding=ks//2): accumulate per-channel partials in
            # a VMEM scratch (boundary taps use static windows -> no zero padding
            # anywhere), then ONE lane reduction over C after the loop.
            acc_scr[...] = jnp.zeros_like(acc_scr)
            k = 0
            for dy in range(-pad, pad + 1):
                dh0, dh1 = max(0, -dy), min(H, H - dy)
                sh0, sh1 = max(0, dy), min(H, H + dy)
                for dx in range(-pad, pad + 1):
                    dw0, dw1 = max(0, -dx), min(W, W - dx)
                    sw0, sw1 = max(0, dx), min(W, W + dx)
                    if dh1 > dh0 and dw1 > dw0:
                        w_tap = wc_ref[k, :].reshape(1, 1, 1, C)
                        acc_scr[:, dh0:dh1, dw0:dw1, :] += (
                            x_ref[:, sh0:sh1, sw0:sw1, :].astype(jnp.float32) * w_tap)
                    k += 1
            conv = jnp.sum(acc_scr[...], axis=-1) + bc_ref[...]          # [Bb, H, W]
            s = _sigmoid(conv)[..., None]                                # [Bb, H, W, 1]
            feat = jnp.sum(x_ref[...].astype(jnp.float32) * s, axis=(1, 2)) * inv_hw
        else:
            feat = pooled

        if use_se:
            feat = feat * a                       # mean(x*s)*a == mean(x*s*a)

        f = jnp.dot(feat, wfc_ref[...], preferred_element_type=jnp.float32) + bfc_ref[...]
        f = jnp.maximum(f, 0.0)                   # F.relu
        if use_drop:
            # F.dropout: keep w.p. (1-p), scale kept activations by 1/(1-p).
            f = jnp.where(u_ref[...] < keep, f * (1.0 / keep), 0.0)
        out = jnp.dot(f, w6_ref[...], preferred_element_type=jnp.float32) + b6_ref[...]
        o_ref[...] = out.astype(o_ref.dtype)      # [Bb, 6] = [xyz | wpqr]

    return kernel


# --------------------------- pallas_call wrappers ---------------------------

def se_apply(x_nhwc, p):
    B, H, W, C = x_nhwc.shape
    HW = H * W
    # Lane packing so the lane dim is a dense multiple of 128 (SE64 -> [HW/2, 128]).
    pack = 1
    if C < 128 and 128 % C == 0 and HW % (128 // C) == 0:
        pack = 128 // C
    HWp, Cp = HW // pack, C * pack
    Bb = _pick_block_batch(B)
    nb = B // Bb

    # bf16 HBM I/O (halves bytes on this bandwidth-bound scale); f32 compute in-kernel.
    x = x_nhwc.reshape(B, HWp, Cp).astype(jnp.bfloat16)
    consts = [p["w1t"], p["b1"], p["w2t"], p["b2"]]
    hid = p["w1t"].shape[1]
    in_specs = [pl.BlockSpec((Bb, HWp, Cp), lambda b: (b, 0, 0))] + [_const_spec(a) for a in consts]
    cost = pl.CostEstimate(
        flops=int(B * (3 * HW * C + 4 * C * hid)),
        transcendentals=int(B * C),
        bytes_accessed=int(2 * B * HW * C * 2 + sum(int(a.size) * 4 for a in consts)),
    )
    out = pl.pallas_call(
        make_se_kernel(pack, HW),
        grid=(nb,),
        in_specs=in_specs,
        out_specs=pl.BlockSpec((Bb, HWp, Cp), lambda b: (b, 0, 0)),
        out_shape=jax.ShapeDtypeStruct((B, HWp, Cp), jnp.bfloat16),
        compiler_params=pltpu.CompilerParams(dimension_semantics=("parallel",)),
        cost_estimate=cost,
    )(x, *consts)
    return out.reshape(B, H, W, C).astype(jnp.float32)


def layer4_head_apply(x_nhwc, params, config, *, training, drop_rate, rng):
    """Layer-4 attention (SE512 and/or spatial, any combo) fused with
    avgpool -> resnet.fc -> relu -> dropout -> [fc_xyz | fc_wpqr] concat."""
    B, H, W, C = x_nhwc.shape
    use_se = bool(config.SE512)
    use_sa = bool(config.spatial_attention)
    ks = int(config.sa_ks) if use_sa else 1
    use_drop = bool(training) and drop_rate > 0.0
    Bb = _pick_block_batch(B)
    nb = B // Bb

    # Keep f32 (8-sublane tiles); no wrapper-side padding (boundaries handled in-kernel).
    x_in = x_nhwc.astype(jnp.float32)

    hp = params["head"]
    feat_dim = hp["wfct"].shape[1]
    w6 = jnp.concatenate([hp["wxyzt"], hp["wwpqrt"]], axis=1)   # [feat_dim, 6]
    b6 = jnp.concatenate([hp["bxyz"], hp["bwpqr"]], axis=1)     # [1, 6]

    inputs = [x_in]
    in_specs = [pl.BlockSpec((Bb, H, W, C), lambda b: (b, 0, 0, 0))]

    def add_const(a):
        inputs.append(a)
        in_specs.append(_const_spec(a))

    if use_sa:
        add_const(params["sa"]["w"])        # [ks*ks, C]
        add_const(params["sa"]["b"])        # [1, 1]
    if use_se:
        se = params["se512"]
        for a in (se["w1t"], se["b1"], se["w2t"], se["b2"]):
            add_const(a)
    for a in (hp["wfct"], hp["bfc"], w6, b6):
        add_const(a)
    if use_drop:
        u = jax.random.uniform(rng, (B, feat_dim), jnp.float32)
        inputs.append(u)
        in_specs.append(pl.BlockSpec((Bb, feat_dim), lambda b: (b, 0)))

    scratch = [pltpu.VMEM((Bb, H, W, C), jnp.float32)] if use_sa else []
    kernel = make_layer4_head_kernel(H, W, ks, use_se, use_sa, use_drop, drop_rate)

    hid = C // 16
    flops = B * (H * W * C * (2 * ks * ks + 6)
                 + (4 * C * hid if use_se else 0)
                 + 2 * C * feat_dim + 2 * feat_dim * 6)
    bytes_acc = sum(int(a.size) * a.dtype.itemsize for a in inputs) + B * 6 * 4
    cost = pl.CostEstimate(flops=int(flops),
                           transcendentals=int(B * (H * W + C)),
                           bytes_accessed=int(bytes_acc))
    return pl.pallas_call(
        kernel,
        grid=(nb,),
        in_specs=in_specs,
        out_specs=pl.BlockSpec((Bb, 6), lambda b: (b, 0)),
        out_shape=jax.ShapeDtypeStruct((B, 6), jnp.float32),
        scratch_shapes=scratch,
        compiler_params=pltpu.CompilerParams(dimension_semantics=("parallel",)),
        cost_estimate=cost,
    )(*inputs)


# -------------------- ResNet backbone stand-in (plain JAX glue) --------------------

def _conv(x, w, stride, pad):
    return lax.conv_general_dilated(
        x, w, window_strides=(stride, stride), padding=pad,
        dimension_numbers=("NHWC", "HWIO", "NHWC"))


def _maxpool_3x3_s2_p1(x):
    return lax.reduce_window(x, -jnp.inf, lax.max,
                             (1, 3, 3, 1), (1, 2, 2, 1),
                             [(0, 0), (1, 1), (1, 1), (0, 0)])


def _bn(x, p):
    return (x - p["mean"]) * lax.rsqrt(p["var"] + 1e-5) * p["gamma"] + p["beta"]


# ------------------------------- parameters --------------------------------

def _kaiming(key, shape, fan_in):
    return jax.random.normal(key, shape, jnp.float32) * jnp.sqrt(2.0 / fan_in)


def init_params(key, feat_dim=128, sa_ks=3):
    keys = iter(jax.random.split(key, 64))
    P = {}
    # backbone stand-in
    P["conv1"] = _kaiming(next(keys), (7, 7, 3, 64), 7 * 7 * 3)
    P["bn1"] = dict(gamma=jnp.ones((64,)), beta=jnp.zeros((64,)),
                    mean=jnp.zeros((64,)), var=jnp.ones((64,)))
    P["layer1"] = _kaiming(next(keys), (3, 3, 64, 64), 3 * 3 * 64)
    P["layer2"] = _kaiming(next(keys), (3, 3, 64, 128), 3 * 3 * 64)
    P["layer3"] = _kaiming(next(keys), (3, 3, 128, 256), 3 * 3 * 128)
    P["layer4"] = _kaiming(next(keys), (3, 3, 256, 512), 3 * 3 * 256)

    def se_params(c):
        h = c // 16                                           # nn.Linear(planes, planes/16)
        return dict(
            w1t=_kaiming(next(keys), (c, h), c),              # fc1.weight^T
            b1=jnp.zeros((1, h), jnp.float32),
            w2t=_kaiming(next(keys), (h, c), h),              # fc2.weight^T
            b2=jnp.zeros((1, c), jnp.float32),
        )

    P["se64"] = se_params(64)
    P["se128"] = se_params(128)
    P["se256"] = se_params(256)
    P["se512"] = se_params(512)

    # Conv2d(512, 1, sa_ks, padding=sa_ks//2); weight stored as [ks*ks taps, 512]
    K = sa_ks * sa_ks
    P["sa"] = dict(
        w=_kaiming(next(keys), (K, 512), K * 512),
        b=jnp.zeros((1, 1), jnp.float32),
    )
    P["head"] = dict(
        wfct=_kaiming(next(keys), (512, feat_dim), 512),      # resnet.fc.weight^T
        bfc=jnp.zeros((1, feat_dim), jnp.float32),
        wxyzt=_kaiming(next(keys), (feat_dim, 3), feat_dim),  # fc_xyz.weight^T
        bxyz=jnp.zeros((1, 3), jnp.float32),
        wwpqrt=_kaiming(next(keys), (feat_dim, 3), feat_dim), # fc_wpqr.weight^T
        bwpqr=jnp.zeros((1, 3), jnp.float32),
    )
    return P


# --------------------------------- forward ---------------------------------

def forward(params, x_nchw, config, *, training=True, drop_rate=0.5, rng=None, seed=0):
    x = jnp.transpose(x_nchw, (0, 2, 3, 1)).astype(jnp.float32)   # NCHW -> NHWC
    # resnet stem + stages (stand-in backbone)
    x = _conv(x, params["conv1"], 2, [(3, 3), (3, 3)])
    x = jax.nn.relu(_bn(x, params["bn1"]))
    x = _maxpool_3x3_s2_p1(x)
    x = jax.nn.relu(_conv(x, params["layer1"], 1, [(1, 1), (1, 1)]))   # 64 ch
    if config.SE64:
        x = se_apply(x, params["se64"])
    x = jax.nn.relu(_conv(x, params["layer2"], 2, [(1, 1), (1, 1)]))   # 128 ch
    if config.SE128:
        x = se_apply(x, params["se128"])
    x = jax.nn.relu(_conv(x, params["layer3"], 2, [(1, 1), (1, 1)]))   # 256 ch
    if config.SE256:
        x = se_apply(x, params["se256"])
    x = jax.nn.relu(_conv(x, params["layer4"], 2, [(1, 1), (1, 1)]))   # 512 ch
    # Fused layer-4 attention (SE512 / spatial, both from the same pre-scale x,
    # exactly like the PyTorch forward) + avgpool + fc + relu + dropout + pose heads.
    if rng is None:
        rng = jax.random.PRNGKey(seed)
    return layer4_head_apply(x, params, config,
                             training=training, drop_rate=drop_rate, rng=rng)


if __name__ == "__main__":
    config = SimpleNamespace(spatial_attention=True, SE64=True, SE128=True,
                             SE256=True, SE512=True, sa_ks=3)
    key = jax.random.PRNGKey(0)
    pkey, xkey, dkey = jax.random.split(key, 3)
    params = init_params(pkey, feat_dim=128, sa_ks=config.sa_ks)
    x = jax.random.normal(xkey, (2, 3, 64, 64), jnp.float32)   # NCHW, like the PyTorch module
    out = forward(params, x, config, training=True, drop_rate=0.5, rng=dkey)
    out = jax.block_until_ready(out)
    assert out.shape == (2, 6) and out.dtype == jnp.float32
    assert bool(jnp.all(jnp.isfinite(out)))
    print("KERNEL_OK")
</pallas_src>

<mosaic_0001>
module attributes {stable_mosaic.version = 11 : i64} {
  func.func @kernel(%arg0: i32, %arg1: memref<1x128x128xbf16, #tpu.memory_space<vmem>>, %arg2: memref<64x4xf32, #tpu.memory_space<vmem>>, %arg3: memref<1x4xf32, #tpu.memory_space<vmem>>, %arg4: memref<4x64xf32, #tpu.memory_space<vmem>>, %arg5: memref<1x64xf32, #tpu.memory_space<vmem>>, %arg6: memref<1x128x128xbf16, #tpu.memory_space<vmem>>) attributes {dimension_semantics = [#tpu.dimension_semantics<parallel>], iteration_bounds = array<i64: 2>, scalar_prefetch = 0 : i64, scratch_operands = 0 : i64, tpu.core_type = #tpu.core_type<tc>, window_params = [{transform_indices = @transform_0, window_bounds = array<i64: 1, 128, 128>}, {pipeline_mode = #tpu.pipeline_mode<synchronous>, transform_indices = @transform_1, window_bounds = array<i64: 64, 4>}, {pipeline_mode = #tpu.pipeline_mode<synchronous>, transform_indices = @transform_2, window_bounds = array<i64: 1, 4>}, {pipeline_mode = #tpu.pipeline_mode<synchronous>, transform_indices = @transform_3, window_bounds = array<i64: 4, 64>}, {pipeline_mode = #tpu.pipeline_mode<synchronous>, transform_indices = @transform_4, window_bounds = array<i64: 1, 64>}, {transform_indices = @transform_5, window_bounds = array<i64: 1, 128, 128>}]} {
    %c0 = arith.constant 0 : index
    %c0_0 = arith.constant 0 : index
    %c0_1 = arith.constant 0 : index
    %0 = vector.load %arg1[%c0, %c0_0, %c0_1] : memref<1x128x128xbf16, #tpu.memory_space<vmem>>, vector<1x128x128xbf16>
    %1 = arith.extf %0 : vector<1x128x128xbf16> to vector<1x128x128xf32>
    %cst = arith.constant dense<0.000000e+00> : vector<1x128xf32>
    %2 = vector.multi_reduction <add>, %1, %cst [1] : vector<1x128x128xf32> to vector<1x128xf32>
    %3 = vector.extract_strided_slice %2 {offsets = [0, 0], sizes = [1, 64], strides = [1, 1]} : vector<1x128xf32> to vector<1x64xf32>
    %4 = vector.extract_strided_slice %2 {offsets = [0, 64], sizes = [1, 64], strides = [1, 1]} : vector<1x128xf32> to vector<1x64xf32>
    %5 = arith.addf %3, %4 : vector<1x64xf32>
    %cst_2 = arith.constant 3.906250e-03 : f32
    %6 = vector.broadcast %cst_2 : f32 to vector<1x64xf32>
    %7 = arith.mulf %5, %6 : vector<1x64xf32>
    %c0_3 = arith.constant 0 : index
    %c0_4 = arith.constant 0 : index
    %8 = vector.load %arg2[%c0_3, %c0_4] : memref<64x4xf32, #tpu.memory_space<vmem>>, vector<64x4xf32>
    %cst_5 = arith.constant dense<0.000000e+00> : vector<1x4xf32>
    %9 = tpu.matmul %7, %8, %cst_5 {dimension_numbers = #tpu.dot_dimension_numbers<[1], [0], [0], [1], [0, 0, 1, 1], [], []>} : vector<1x64xf32>, vector<64x4xf32>, vector<1x4xf32> -> vector<1x4xf32>
    %c0_6 = arith.constant 0 : index
    %c0_7 = arith.constant 0 : index
    %10 = vector.load %arg3[%c0_6, %c0_7] : memref<1x4xf32, #tpu.memory_space<vmem>>, vector<1x4xf32>
    %11 = arith.addf %9, %10 : vector<1x4xf32>
    %cst_8 = arith.constant 0.000000e+00 : f32
    %12 = vector.broadcast %cst_8 : f32 to vector<1x4xf32>
    %13 = arith.maximumf %11, %12 : vector<1x4xf32>
    %c0_9 = arith.constant 0 : index
    %c0_10 = arith.constant 0 : index
    %14 = vector.load %arg4[%c0_9, %c0_10] : memref<4x64xf32, #tpu.memory_space<vmem>>, vector<4x64xf32>
    %cst_11 = arith.constant dense<0.000000e+00> : vector<1x64xf32>
    %15 = tpu.matmul %13, %14, %cst_11 {dimension_numbers = #tpu.dot_dimension_numbers<[1], [0], [0], [1], [0, 0, 1, 1], [], []>} : vector<1x4xf32>, vector<4x64xf32>, vector<1x64xf32> -> vector<1x64xf32>
    %c0_12 = arith.constant 0 : index
    %c0_13 = arith.constant 0 : index
    %16 = vector.load %arg5[%c0_12, %c0_13] : memref<1x64xf32, #tpu.memory_space<vmem>>, vector<1x64xf32>
    %17 = arith.addf %15, %16 : vector<1x64xf32>
    %cst_14 = arith.constant 0.000000e+00 : f32
    %18 = vector.broadcast %cst_14 : f32 to vector<1x64xf32>
    %19 = arith.subf %18, %17 : vector<1x64xf32>
    %20 = math.exp %19 : vector<1x64xf32>
    %cst_15 = arith.constant 1.000000e+00 : f32
    %21 = vector.broadcast %cst_15 : f32 to vector<1x64xf32>
    %22 = arith.addf %21, %20 : vector<1x64xf32>
    %cst_16 = arith.constant 1.000000e+00 : f32
    %23 = vector.broadcast %cst_16 : f32 to vector<1x64xf32>
    %24 = arith.divf %23, %22 : vector<1x64xf32>
    %25 = tpu.concatenate %24, %24 in 1 : vector<1x64xf32>, vector<1x64xf32> -> vector<1x128xf32>
    %c0_17 = arith.constant 0 : index
    %c0_18 = arith.constant 0 : index
    %c0_19 = arith.constant 0 : index
    %26 = vector.load %arg1[%c0_17, %c0_18, %c0_19] : memref<1x128x128xbf16, #tpu.memory_space<vmem>>, vector<1x128x128xbf16>
    %27 = arith.extf %26 : vector<1x128x128xbf16> to vector<1x128x128xf32>
    %28 = vector.shape_cast %25 : vector<1x128xf32> to vector<1x1x128xf32>
    %29 = vector.broadcast %28 : vector<1x1x128xf32> to vector<1x128x128xf32>
    %30 = arith.mulf %27, %29 : vector<1x128x128xf32>
    %31 = arith.truncf %30 : vector<1x128x128xf32> to vector<1x128x128xbf16>
    %c0_20 = arith.constant 0 : index
    %c0_21 = arith.constant 0 : index
    %c0_22 = arith.constant 0 : index
    %32 = vector.load %arg6[%c0_20, %c0_21, %c0_22] : memref<1x128x128xbf16, #tpu.memory_space<vmem>>, vector<1x128x128xbf16>
    tpu.vector_store %arg6[%c0_20, %c0_21, %c0_22], %31 {strides = array<i32>} : memref<1x128x128xbf16, #tpu.memory_space<vmem>>, vector<1x128x128xbf16>,
    return
  }
  func.func @transform_0(%arg0: i32) -> (i32, i32, i32) {
    %c0_i32 = arith.constant 0 : i32
    %c0_i32_0 = arith.constant 0 : i32
    %c0_i32_1 = arith.constant 0 : i32
    return %arg0, %c0_i32, %c0_i32_0 : i32, i32, i32
  }
  func.func @transform_1(%arg0: i32) -> (i32, i32) {
    %c0_i32 = arith.constant 0 : i32
    %c0_i32_0 = arith.constant 0 : i32
    %c0_i32_1 = arith.constant 0 : i32
    return %c0_i32, %c0_i32_0 : i32, i32
  }
  func.func @transform_2(%arg0: i32) -> (i32, i32) {
    %c0_i32 = arith.constant 0 : i32
    %c0_i32_0 = arith.constant 0 : i32
    %c0_i32_1 = arith.constant 0 : i32
    return %c0_i32, %c0_i32_0 : i32, i32
  }
  func.func @transform_3(%arg0: i32) -> (i32, i32) {
    %c0_i32 = arith.constant 0 : i32
    %c0_i32_0 = arith.constant 0 : i32
    %c0_i32_1 = arith.constant 0 : i32
    return %c0_i32, %c0_i32_0 : i32, i32
  }
  func.func @transform_4(%arg0: i32) -> (i32, i32) {
    %c0_i32 = arith.constant 0 : i32
    %c0_i32_0 = arith.constant 0 : i32
    %c0_i32_1 = arith.constant 0 : i32
    return %c0_i32, %c0_i32_0 : i32, i32
  }
  func.func @transform_5(%arg0: i32) -> (i32, i32, i32) {
    %c0_i32 = arith.constant 0 : i32
    %c0_i32_0 = arith.constant 0 : i32
    %c0_i32_1 = arith.constant 0 : i32
    return %arg0, %c0_i32, %c0_i32_0 : i32, i32, i32
  }
}

</mosaic_0001>

<bundles_post_ra>
// kernel: tpu_custom_call.1
= control target key start
LH: loop header
LB: loop body
LE: loop exit
PB: predicated region body
PF: predicated region fallthrough
CT: control target
= control target key end

     0   :  { %10 = vsyncpa [#allocation3], 0  ;;  %s1338_s0 = inlined_call_operand.hbm [shape: bf16[2,128,128], index: 0, kind: input, shape index: {}]   ;;  %s1339_s1 = inlined_call_operand.vmem [shape: f32[64,4], index: 1, kind: input, shape index: {}]   ;;  %s1340_s2 = inlined_call_operand.vmem [shape: f32[1,4], index: 2, kind: input, shape index: {}]   ;;  %s1341_s3 = inlined_call_operand.vmem [shape: f32[4,64], index: 3, kind: input, shape index: {}]   ;;  %s1342_s4 = inlined_call_operand.vmem [shape: f32[1,64], index: 4, kind: input, shape index: {}]   ;;  %s1343_s5 = inlined_call_operand.hbm [shape: bf16[2,128,128], index: 5, kind: output, shape index: {}]  }
   0x1   :  { %12 = vsyncpa [#allocation3 + $0x1], 0 }
   0x2   :  { %13 = vsyncpa [#allocation4], 0 }
   0x3   :  { %15 = vsyncpa [#allocation4 + $0x1], 0  ;;  %s1024_s18 = smov 0   ;;  %s1026_s19 = smov 0  }
   0x4   :  { %s1028_s20 = smov 0   ;;  %s1030_s21 = smov 0  }
   0x5 LB: > { %s1045_s22 = sadd.s32 4294967295, %s984_s21   ;;  %s664_s23 = sadd.s32 4294967294, %s984_s21   ;;  %s984_s21 = sphi %s1030_s21, %s1358_s21   ;;  %s980_s20 = sphi %s1028_s20, %s1357_s20   ;;  %s976_s19 = sphi %s1026_s19, %s1356_s19   ;;  %s972_s18 = sphi %s1024_s18, %s1355_s18  }
   0x6   : > { %s1049_s24 = sadd.s32 1, %s984_s21   ;;  %s28_s25 = sadd.s32 1, %s980_s20 }
   0x7   : > { %s25_s26 = ssub.s32 %s984_s21, %s1049_s24  ;;  %p35_p0 = scmp.ne.s32.totalorder %s980_s20, %s976_s19 }
   0x8   : > { %p26_p1 = scmp.eq.s32.totalorder %s25_s26, 0  ;;  %p36_p2 = scmp.eq.s32.totalorder %s984_s21, 0 }
   0x9   : > { %p41_p3 = scmp.ne.s32.totalorder %s976_s19, %s972_s18  ;;  %p42_p4 = scmp.eq.s32.totalorder %s1045_s22, 0 }
   0xa   : > { %s1061_s27 = scalar_select %p26_p1, %s980_s20, %s28_s25  }
   0xb   : > { %p1063_p5 = por %p36_p2, %p35_p0  ;;  %p1067_p6 = por %p42_p4, %p41_p3 }
   0xc   : > { %p149_p7 = scmp.eq.s32.totalorder %s1045_s22, 1  ;;  %p155_p8 = scmp.eq.s32.totalorder %s664_s23, 1 }
   0xd   : > { %s1347_s29 = scalar_select %p1067_p6, 1, 0 }
   0xe   : > { %p848_p10 = scmp.lt.s32.totalorder %s984_s21, 2  ;;  %p1074_p11 = por %p149_p7, %p35_p0 }
   0xf   : > { %p1078_p12 = por %p155_p8, %p41_p3  ;;  %s187_s7 = sand.u32 1, %s980_s20  }
  0x10   : > { %s1348_s30 = scalar_select %p1074_p11, 1, 0 }
  0x11   : > { %s1349_s6 = scalar_select %p1078_p12, 1, 0 }
  0x12   : > { %s697_s8 = sshll.u32 %s984_s21, 10  ;;  %s667_s9 = sshll.u32 %s187_s7, 6 }
  0x13   : > { %s1087_s12 = scalar_lea.hbm %s1338_s0, %s697_s8  ;;  %s191_s13 = scalar_lea.vmem [#allocation2], %s667_s9 }
  0x14   : > { %s198_s14 = sshll.u32 %s191_s13, 4  ;;  %p1091_p13 = pnand %p848_p10, %p1063_p5  ;;  %s1095_s14 = int_to_ptr.vmem [resolvable:$true] %s198_s14 }
  0x15   : > { %s1097_s16 = scalar_lea.sflag [#allocation3], %s187_s7  ;;  %s892_s17 = scalar_lea.hbm %s1087_s12, 1024 }
  0x16   : > { %p893_p0 = scmp.ne.s32.totalorder %s1087_s12, %s892_s17  ;;  %p894_p1 = pneg %p1091_p13 }
  0x17   : > { %s897_s26 = scalar_lea.hbm %s1338_s0, 2048  ;;  %p898_p4 = scmp.lt.s32.totalorder %s1087_s12, %s1338_s0 }
  0x18   : > { %p895_p2 = pnand %p894_p1, %p893_p0  ;;  %p899_p5 = scmp.lt.s32.totalorder %s897_s26, %s892_s17 }
  0x1a   : > { %p896_p3 = pneg %p895_p2  ;;  %p900_p7 = por %p899_p5, %p898_p4 }
  0x1c   : > { %p901_p8 = pnand %p900_p7, %p896_p3 }
  0x1e   : > { %904 = shalt.err (!%p901_p8)
}
  0x1f   : > { %s905_s7 = scalar_lea.vmem %s1095_s14, 1024  ;;  %s986_s9 = smov [#allocation2]  }
  0x20   : > { %p906_p10 = scmp.ne.s32.totalorder %s1095_s14, %s905_s7  ;;  %s910_s10 = sshll.u32 %s986_s9, 4  ;;  %s911_s10 = int_to_ptr.vmem [resolvable:$false] %s910_s10 }
  0x21   : > { %s912_s11 = scalar_lea.vmem %s911_s10, 2048  ;;  %p913_p2 = scmp.lt.s32.totalorder %s1095_s14, %s911_s10 }
  0x22   : > { %p908_p9 = pnand %p906_p10, %p894_p1  ;;  %p914_p12 = scmp.lt.s32.totalorder %s912_s11, %s905_s7 }
  0x24   : > { %p909_p0 = pneg %p908_p9  ;;  %p915_p11 = por %p914_p12, %p913_p2 }
  0x26   : > { %p916_p6 = pnand %p915_p11, %p909_p0 }
  0x28   : > { %919 = shalt.err (!%p916_p6)
}
  0x29   : > { %s987_s13 = smov 64   ;;  %s988_s17 = smov 4  }
  0x2a   : > { %843 = dma.hbm_to_vmem [thread:$0]  (!%p1091_p13), %s1087_s12, 1024, %s1095_s14, %s1097_s16, %s987_s13, %s987_s13, %s988_s17  }
  0x2b   : > { %p670_p9 = scmp.ge.s32.totalorder %s984_s21, 1  ;;  %p206_p1 = scmp.lt.s32.totalorder %s984_s21, 3 }
  0x2d   : > { %p207_p3 = pnand %p670_p9, %p206_p1 }
  0x2e   : > { %s1121_s23 = sand.u32 (!%p207_p3), 1, %s976_s19   ;;  %p1351_p6 = scmp.ne.s32.totalorder (!%p207_p3), %s1347_s29, 0 }
  0x2f   : > { %210 = sbr.rel (%p207_p3) target bundleno = 784 (0x310), region = 40  ;;  %s671_s25 = sshll.u32 (!%p207_p3), %s1121_s23, 6 }
  0x30   : > { %s213_s26 = scalar_lea.sflag (!%p207_p3), [#allocation3], %s1121_s23  ;;  %s1127_s28 = scalar_lea.vmem (!%p207_p3), [#allocation2], %s671_s25 }
  0x34   : > { %963 = dma.done.wait (%p1351_p6), %s213_s26, 1024  }
  0x35   : > { %965 = vsyncadd (%p1351_p6), %s213_s26, 4294966272  ;;  %v989_v0 = vmov 0.0   ;;  %v1136_v1 = vld [vmem:[%s1127_s28] sm:$0xff]   ;;  %v1139_v2 = vld [vmem:[%s1127_s28 + $0x8] sm:$0xff]   ;;  %vm990_vm0 = vmmov 0   ;;  %s991_s29 = smov 64  }
  0x36   : > { %812 = vmatprep.subr.mxu0 %v989_v0  ;;  %831 = vmatprep.subr.mxu1 %v989_v0  ;;  %v717_v3 = vunpack.c.l.bf16 %v1136_v1  ;;  %v718_v4 = vunpack.c.h.bf16 %v1136_v1  ;;  %v309_v5 = vld [vmem:[%s1339_s1 + $0x38] sm:$0xff]  ;;  %v721_v6 = vunpack.c.l.bf16 %v1139_v2  ;;  %v308_v7 = vld [vmem:[%s1339_s1 + $0x30] sm:$0xff]  ;;  %v307_v9 = vld [vmem:[%s1339_s1 + $0x28] sm:$0xff]  ;;  %v722_v10 = vunpack.c.h.bf16 %v1139_v2  ;;  %s714_s11 = sshll.u32 %s1045_s22, 10  ;;  %s242_s13 = scalar_lea.vmem [#allocation5], %s671_s25 }
  0x37   : > { %813 = vmatpush3.msra.mxu0 %v309_v5  ;;  %v1151_v8 = vld [vmem:[%s1127_s28 + $0x10] sm:$0xff]   ;;  %v306_v12 = vld [vmem:[%s1339_s1 + $0x20] sm:$0xff]  ;;  %v1170_v15 = vld [vmem:[%s1127_s28 + $0x18] sm:$0xff]   ;;  %828 = vmatprep.mubr.msk.f32.mxu0 %vm990_vm0, %v989_v0  ;;  %vm311_vm1 = vcmask 523264   ;;  %vm392_vm2 = vcmask 1043456   ;;  %vm388_vm3 = vcmask 31744   ;;  %s1291_s26 = scalar_lea.hbm %s1343_s5, %s714_s11 }
  0x38   : > { %814 = vmatprep.subr.mxu0 %v989_v0  ;;  %v275_v11 = vadd.f32 %v718_v4, %v717_v3  ;;  %v725_v13 = vunpack.c.l.bf16 %v1151_v8  ;;  %v305_v16 = vld [vmem:[%s1339_s1 + $0x18] sm:$0xff]  ;;  %v726_v17 = vunpack.c.h.bf16 %v1151_v8  ;;  %v304_v19 = vld [vmem:[%s1339_s1 + $0x10] sm:$0xff]  ;;  %v729_v20 = vunpack.c.l.bf16 %v1170_v15  ;;  %v1187_v22 = vld [vmem:[%s1127_s28 + $0x20] sm:$0xff]   ;;  %833 = vmatprep.mubr.msk.f32.mxu1 %vm990_vm0, %v989_v0  ;;  %s591_s17 = sshll.u32 %s242_s13, 4  ;;  %p1352_p12 = scmp.ne.s32.totalorder %s1348_s30, 0  ;;  %s1293_s17 = int_to_ptr.vmem [resolvable:$true] %s591_s17 }
  0x39   : > { %815 = vmatpush3.msra.mxu0 %v308_v7  ;;  %v730_v23 = vunpack.c.h.bf16 %v1170_v15  ;;  %v733_v25 = vunpack.c.l.bf16 %v1187_v22  ;;  %v1198_v27 = vld [vmem:[%s1127_s28 + $0x28] sm:$0xff]   ;;  %v734_v28 = vunpack.c.h.bf16 %v1187_v22  ;;  %v1207_v32 = vld [vmem:[%s1127_s28 + $0x30] sm:$0xff]   ;;  %v1216_v37 = vld [vmem:[%s1127_s28 + $0x38] sm:$0xff]   ;;  %s578_s28 = scalar_lea.sflag [#allocation4], %s1121_s23  ;;  %s920_s12 = scalar_lea.vmem %s1293_s17, 1024 }
  0x3a   : > { %816 = vmatprep.subr.mxu0 %v989_v0  ;;  %v276_v14 = vadd.f32 %v721_v6, %v275_v11  ;;  %v737_v30 = vunpack.c.l.bf16 %v1198_v27  ;;  %v738_v33 = vunpack.c.h.bf16 %v1198_v27  ;;  %v741_v35 = vunpack.c.l.bf16 %v1207_v32  ;;  %v303_v46 = vld [vmem:[%s1339_s1 + $0x8] sm:$0xff]  ;;  %v302_v48 = vld [vmem:[%s1339_s1] sm:$0xff]  ;;  %p921_p11 = scmp.ne.s32.totalorder %s1293_s17, %s920_s12  ;;  %s992_s14 = smov [#allocation5]  }
  0x3b   : > { %817 = vmatpush3.msra.mxu0 %v307_v9  ;;  %v742_v38 = vunpack.c.h.bf16 %v1207_v32  ;;  %v745_v40 = vunpack.c.l.bf16 %v1216_v37  ;;  %v746_v42 = vunpack.c.h.bf16 %v1216_v37  ;;  %v386_v57 = vld [vmem:[%s1341_s3] sm:$0xf]  ;;  %s924_s15 = sshll.u32 %s992_s14, 4  ;;  %s925_s15 = int_to_ptr.vmem [resolvable:$false] %s924_s15 }
  0x3c   : > { %818 = vmatprep.subr.mxu0 %v989_v0  ;;  %v277_v18 = vadd.f32 %v722_v10, %v276_v14  ;;  %832 = vmatpush3.msk.msra.mxu1 %vm392_vm2, %v386_v57  ;;  %v310_v58 = vld [vmem:[%s1340_s2] sm:$0x1]  ;;  %p922_p13 = pnand %p921_p11, %p1352_p12  ;;  %s926_s16 = scalar_lea.vmem %s925_s15, 2048 }
  0x3d   : > { %819 = vmatpush3.msra.mxu0 %v306_v12  ;;  %v387_v63 = vld [vmem:[%s1342_s4] sm:$0x1]  ;;  %p927_p5 = scmp.lt.s32.totalorder %s1293_s17, %s925_s15  ;;  %p928_p7 = scmp.lt.s32.totalorder %s926_s16, %s920_s12 }
  0x3e   : > { %820 = vmatprep.subr.mxu0 %v989_v0  ;;  %v278_v21 = vadd.f32 %v725_v13, %v277_v18  ;;  %v477_v18 = vlaneseq  ;;  %p923_p4 = pneg %p922_p13 }
  0x3f   : > { %821 = vmatpush3.msra.mxu0 %v305_v16  ;;  %p929_p8 = por %p928_p7, %p927_p5 }
  0x40   : > { %822 = vmatprep.subr.mxu0 %v989_v0  ;;  %v279_v24 = vadd.f32 %v726_v17, %v278_v21 }
  0x41   : > { %823 = vmatpush3.msra.mxu0 %v304_v19  ;;  %v478_v19 = vshrl.u32 %v477_v18, 7  ;;  %p930_p10 = pnand %p929_p8, %p923_p4 }
  0x42   : > { %824 = vmatprep.subr.mxu0 %v989_v0  ;;  %v280_v26 = vadd.f32 %v729_v20, %v279_v24 }
  0x43   : > { %825 = vmatpush3.msra.mxu0 %v303_v46  ;;  %v479_v21 = vsub.s32 0, %v478_v19 }
  0x44   : > { %v281_v29 = vadd.f32 %v730_v23, %v280_v26  ;;  %826 = vmatprep.subr.mxu0 %v989_v0 }
  0x45   : > { %827 = vmatpush3.msra.mxu0 %v302_v48 }
  0x46   : > { %v282_v31 = vadd.f32 %v733_v25, %v281_v29 }
  0x48   : > { %v283_v34 = vadd.f32 %v734_v28, %v282_v31 }
  0x4a   : > { %v284_v36 = vadd.f32 %v737_v30, %v283_v34 }
  0x4c   : > { %v285_v39 = vadd.f32 %v738_v33, %v284_v36 }
  0x4e   : > { %v286_v41 = vadd.f32 %v741_v35, %v285_v39 }
  0x50   : > { %v287_v43 = vadd.f32 %v742_v38, %v286_v41 }
  0x52   : > { %v288_v44 = vadd.f32 %v745_v40, %v287_v43 }
  0x54   : > { %v289_v45 = vadd.f32 %v746_v42, %v288_v44 }
  0x56   : > { %v290_v47 = vrot.slane %v289_v45, 4 }
  0x58   : > { %v291_v49 = vadd.f32 %v290_v47, %v289_v45 }
  0x5a   : > { %v292_v50 = vrot.slane %v291_v49, 2 }
  0x5c   : > { %v293_v51 = vadd.f32 %v292_v50, %v291_v49 }
  0x5e   : > { %v294_v52 = vrot.slane %v293_v51, 1 }
  0x60   : > { %v295_v53 = vadd.f32 %v294_v52, %v293_v51 }
  0x62   : > { %297 = vrot.lane.b32.xlu0 %v295_v53, %s991_s29 }
  0xd4   : > { %v298_v54 = vpop.permute.xlu0 %297 }
  0xd5   : > { %v300_v55 = vadd.f32 %v298_v54, %v295_v53 }
  0xd7   : > { %v301_v56 = vmul.f32 0.00390625, %v300_v55 }
  0xd9   : > { %829 = vmatmul.mubr.msk.f32.vlgmr.msra.gmra.mxu0 %vm311_vm1, %v301_v56 }
 0x199   : > { %v381_v59 = vpop.f32.mrf.mxu0 }
 0x19a   : > { %v382_v60 = vadd.f32 %v381_v59, %v310_v58 }
 0x19b   : > { %v830_v61 = vpop.f32.mrf.mxu0 }
 0x19c   : > { %v385_v62 = vmax.f32 %v382_v60, 0.0 }
 0x19e   : > { %834 = vmatmul.mubr.msk.f32.vlgmr.msra.gmra.mxu1 %vm388_vm3, %v385_v62 }
 0x25e   : > { %v462_v0 = vpop.f32.mrf.mxu1 }
 0x25f   : > { %v463_v5 = vadd.f32 %v462_v0, %v387_v63 }
 0x260   : > { %v835_v7 = vpop.f32.mrf.mxu1 }
 0x261   : > { %v466_v9 = vsub.f32 0.0, %v463_v5 }
 0x263   : > { %v467_v11 = vmul.f32 1.442695, %v466_v9 }
 0x265   : > { %888 = vpow2.f32 %v467_v11 }
 0x272   : > { %v889_v12 = vpop.eup %888 }
 0x273   : > { %v469_v14 = vadd.f32 1.0, %v889_v12 }
 0x275   : > { %890 = vrcp.f32 %v469_v14 }
 0x282   : > { %v891_v16 = vpop.eup %890 }
 0x283   : > { %473 = vrot.lane.b32.xlu0 %v891_v16, %s991_s29 }
 0x2f5   : > { %v474_v24 = vpop.permute.xlu0 %473 }
 0x2f6   : > { %v476_v26 = vsel %vm311_vm1, %v891_v16, %v474_v24 }
 0x2f7   : > { %v480_v29 = vrot.slane %v476_v26, %v479_v21 }
 0x2f9   : > { %v481_v31 = vmul.f32 %v717_v3, %v480_v29  ;;  %v482_v34 = vmul.f32 %v718_v4, %v480_v29  ;;  %v483_v36 = vmul.f32 %v721_v6, %v480_v29  ;;  %v484_v39 = vmul.f32 %v722_v10, %v480_v29 }
 0x2fa   : > { %v485_v41 = vmul.f32 %v725_v13, %v480_v29  ;;  %v486_v43 = vmul.f32 %v726_v17, %v480_v29  ;;  %v487_v44 = vmul.f32 %v729_v20, %v480_v29  ;;  %v488_v3 = vmul.f32 %v730_v23, %v480_v29 }
 0x2fb   : > { %v489_v1 = vmul.f32 %v733_v25, %v480_v29  ;;  %v490_v2 = vmul.f32 %v734_v28, %v480_v29  ;;  %v491_v4 = vmul.f32 %v737_v30, %v480_v29  ;;  %v492_v6 = vmul.f32 %v738_v33, %v480_v29 }
 0x2fc   : > { %v493_v8 = vmul.f32 %v741_v35, %v480_v29  ;;  %v494_v10 = vmul.f32 %v742_v38, %v480_v29  ;;  %v495_v13 = vmul.f32 %v745_v40, %v480_v29  ;;  %v496_v15 = vmul.f32 %v746_v42, %v480_v29 }
 0x2fd   : > { %v750_v17 = vpack.c.bf16 %v482_v34, %v481_v31  ;;  %v755_v20 = vpack.c.bf16 %v484_v39, %v483_v36  ;;  %v760_v22 = vpack.c.bf16 %v486_v43, %v485_v41  ;;  %v765_v23 = vpack.c.bf16 %v488_v3, %v487_v44 }
 0x2fe   : > { %v770_v25 = vpack.c.bf16 %v490_v2, %v489_v1  ;;  %v775_v27 = vpack.c.bf16 %v492_v6, %v491_v4  ;;  %v780_v28 = vpack.c.bf16 %v494_v10, %v493_v8  ;;  %v785_v30 = vpack.c.bf16 %v496_v15, %v495_v13 }
 0x2ff   : > { %751 = vst [vmem:[%s242_s13] sm:$0xff] %v750_v17   ;;  %794 = vst [vmem:[%s242_s13 + $0x8] sm:$0xff] %v755_v20  }
 0x300   : > { %795 = vst [vmem:[%s242_s13 + $0x10] sm:$0xff] %v760_v22   ;;  %796 = vst [vmem:[%s242_s13 + $0x18] sm:$0xff] %v765_v23  }
 0x301   : > { %797 = vst [vmem:[%s242_s13 + $0x20] sm:$0xff] %v770_v25   ;;  %798 = vst [vmem:[%s242_s13 + $0x28] sm:$0xff] %v775_v27  }
 0x302   : > { %799 = vst [vmem:[%s242_s13 + $0x30] sm:$0xff] %v780_v28   ;;  %800 = vst [vmem:[%s242_s13 + $0x38] sm:$0xff] %v785_v30  }
 0x303   : > { %933 = shalt.err (!%p930_p10)
}
 0x304   : > { %s934_s8 = scalar_lea.hbm %s1291_s26, 1024  ;;  %s938_s10 = scalar_lea.hbm %s1343_s5, 2048 }
 0x305   : > { %p935_p0 = scmp.ne.s32.totalorder %s1291_s26, %s934_s8  ;;  %p939_p1 = scmp.lt.s32.totalorder %s1291_s26, %s1343_s5 }
 0x306   : > { %p940_p3 = scmp.lt.s32.totalorder %s938_s10, %s934_s8 }
 0x307   : > { %p936_p2 = pnand %p935_p0, %p1352_p12 }
 0x308   : > { %p941_p6 = por %p940_p3, %p939_p1 }
 0x309   : > { %p937_p9 = pneg %p936_p2 }
 0x30b   : > { %p942_p11 = pnand %p941_p6, %p937_p9 }
 0x30d   : > { %945 = shalt.err (!%p942_p11)
}
 0x30e   : > { %s993_s22 = smov 4  }
 0x30f   : > { %838 = dma.vmem_to_hbm [thread:$0]  (%p1352_p12), %s1293_s17, 1024, %s1291_s26, %s578_s28, %s991_s29, %s991_s29, %s993_s22  }
 0x310 PF: > { %s606_s25 = sand.u32 1, %s972_s18   ;;  %p1353_p13 = scmp.ne.s32.totalorder %s1349_s6, 0 }
 0x311   : > { %p1354_p4 = scmp.ge.s32.totalorder %s984_s21, 2  ;;  %s607_s12 = scalar_lea.sflag [#allocation4], %s606_s25 }
 0x313   : > { %p845_p5 = pnand %p1354_p4, %p1353_p13 }
 0x315   : > { %p846_p7 = pneg %p845_p5 }
 0x317   : > { %967 = dma.done.wait (%p846_p7), %s607_s12, 1024  }
 0x318   : > { %969 = vsyncadd (%p846_p7), %s607_s12, 4294966272  ;;  %p18_p8 = scmp.ge.s32.totalorder %s1049_s24, 4   ;;  %s1355_s18 = smov %s976_s19 }
 0x319   : > { %s1356_s19 = smov %s980_s20  ;;  %s1357_s20 = smov %s1061_s27 }
 0x31a   : > { %s1358_s21 = smov %s1049_s24  ;;  %20 = sbr.rel (!%p18_p8) target bundleno = 5 (0x5), region = 85 }
 0x31f   :  { %612 = vsyncpa [#allocation3], 1 }
 0x320   :  { %614 = vsyncpa [#allocation3 + $0x1], 1 }
 0x321   :  { %615 = vsyncpa [#allocation4], 1 }
 0x322   :  { %617 = vsyncpa [#allocation4 + $0x1], 1 }

</bundles_post_ra>
